<compile_context>
chip_gen: v7x
topology: tpu7x:2x2x1
jax: 0.10.0
libtpu: 0.0.40
codegen_flags: <defaults>
</compile_context>

<pallas_src>
import functools

import jax
import jax.numpy as jnp
import numpy as np
from jax.experimental import pallas as pl
from jax.experimental.pallas import tpu as pltpu


def _round_up(x, m):
    return (x + m - 1) // m * m


def _cdiv(a, b):
    return (a + b - 1) // b


def _vmem_capacity_bytes():
    """Physical VMEM of the attached TPU generation; conservative 64 MiB (v7x) fallback."""
    try:
        cap = int(pltpu.get_tpu_info().vmem_capacity_bytes)
        if cap > 0:
            return cap
    except Exception:
        pass
    return 64 << 20


# --------------------------------- kernels ---------------------------------
def _softmax_rows(logits, approx_recip):
    # Softmax over the last (lane) dim in f32. approx_recip uses the EUP reciprocal (cheap,
    # off the VALU critical path) but perturbs row sums by ~1e-3, so it is opt-in only.
    m = jnp.max(logits, axis=-1, keepdims=True)
    e = jnp.exp(logits - m)
    denom = jnp.sum(e, axis=-1, keepdims=True)
    if approx_recip:
        return e * pl.reciprocal(denom, approx=True)
    return e / denom


def _mlp_kernel_resident(x_ref, w1_ref, b1_ref, w2_ref, b2_ref, out_ref, *,
                         matmul_dtype, approx_recip):
    """Whole W1/W2 resident in VMEM; the grid iterates over row tiles only."""
    x = x_ref[...]                                                      # (tm, Kpad)
    h = jnp.dot(x, w1_ref[...], preferred_element_type=jnp.float32) + b1_ref[...]
    h = jnp.maximum(h, 0.0)                                             # ReLU in f32
    logits = (jnp.dot(h.astype(matmul_dtype), w2_ref[...],
                      preferred_element_type=jnp.float32) + b2_ref[...])
    # NOTE: logits/b2 must stay f32 so the -1e30 padded-lane bias stays finite (not -inf).
    out_ref[...] = _softmax_rows(logits, approx_recip).astype(out_ref.dtype)


def _mlp_kernel_hidden_tiled(x_ref, w1_ref, b1_ref, w2_ref, b2_ref, out_ref, acc_ref, *,
                             matmul_dtype, approx_recip):
    """Hidden dim tiled on grid axis 1; f32 logits accumulator lives in VMEM scratch."""
    k = pl.program_id(1)

    @pl.when(k == 0)
    def _():
        acc_ref[...] = jnp.broadcast_to(b2_ref[...], acc_ref.shape)

    h = (jnp.dot(x_ref[...], w1_ref[...], preferred_element_type=jnp.float32)
         + b1_ref[...])
    h = jnp.maximum(h, 0.0)                 # ReLU is elementwise -> valid per hidden chunk
    acc_ref[...] += jnp.dot(h.astype(matmul_dtype), w2_ref[...],
                            preferred_element_type=jnp.float32)

    @pl.when(k == pl.num_programs(1) - 1)
    def _():
        out_ref[...] = _softmax_rows(acc_ref[...], approx_recip).astype(out_ref.dtype)


# ------------------------------- weight packing -------------------------------
def pack_params(params, *, matmul_dtype=jnp.bfloat16):
    """Pad / transpose / cast torch.nn.Linear-layout weights ONCE (not per forward call).

    params: {"w1": (HID, IN), "b1": (HID,), "w2": (OUT, HID), "b2": (OUT,)}
    Feature dims are zero-padded to multiples of 128 so every kernel load/store is
    lane-dense. Padded output lanes get a -1e30 bias so they contribute exp(.)=0 to the
    softmax; this is only safe while b2 and the logits stay f32 (never cast them to bf16).
    """
    mdt = jnp.dtype(matmul_dtype)
    HID, IN = params["w1"].shape
    OUT = params["w2"].shape[0]
    kpad, hpad, opad = (_round_up(d, 128) for d in (IN, HID, OUT))
    w1 = jnp.zeros((kpad, hpad), mdt).at[:IN, :HID].set(
        jnp.asarray(params["w1"]).T.astype(mdt))
    b1 = jnp.zeros((1, hpad), jnp.float32).at[0, :HID].set(
        jnp.asarray(params["b1"]).astype(jnp.float32))
    w2 = jnp.zeros((hpad, opad), mdt).at[:HID, :OUT].set(
        jnp.asarray(params["w2"]).T.astype(mdt))
    b2 = jnp.full((1, opad), -1e30, jnp.float32).at[0, :OUT].set(
        jnp.asarray(params["b2"]).astype(jnp.float32))
    return {"w1": w1, "b1": b1, "w2": w2, "b2": b2,
            "dims": (IN, HID, OUT), "matmul_dtype": mdt}


# ---------------------------------- wrapper ----------------------------------
def mlp_forward(x, packed, *, tm_max=512, out_dtype=jnp.float32,
                approx_softmax_recip=False, hidden_block=None):
    """Fused fc1 -> ReLU -> fc2 -> softmax(dim=1).

    x: (N, input_size). packed: output of pack_params (weights pre-padded/transposed/cast).
    hidden_block: None = auto (resident weights if they fit VMEM, else tile the hidden dim);
                  int  = force hidden-dim tiling with that chunk size (multiple of 128).
    Pack with matmul_dtype=jnp.float32 only for validation; bf16 is the production default
    (v7x MXU has no native f32 path).
    """
    N, IN = x.shape
    in_sz, _, OUT = packed["dims"]
    assert IN == in_sz, "x feature dim does not match packed params"
    mdt = packed["matmul_dtype"]
    w1, b1, w2, b2 = packed["w1"], packed["b1"], packed["w2"], packed["b2"]
    kpad, hpad = w1.shape
    opad = w2.shape[1]
    wb = jnp.dtype(mdt).itemsize
    ob = jnp.dtype(out_dtype).itemsize

    cap = _vmem_capacity_bytes()
    budget = int(0.65 * cap)          # generation-aware (128 MiB on v5e/v6e, 64 MiB on v7x)

    # Balanced row tiling: padding < one tile; >= 2 grid steps when N > 8 (v7x dual TC).
    n_tiles = max(_cdiv(N, tm_max), 2 if N > 8 else 1)
    tm = _round_up(_cdiv(N, n_tiles), 8)
    tm_floor = min(tm, 256)           # keep the 256x256 MXU fed; never shrink below this

    def resident_vmem(tm_):
        wts = (kpad * hpad + hpad * opad) * wb + (hpad + opad) * 4   # single-buffered
        act = 2 * tm_ * kpad * wb + 2 * tm_ * opad * ob              # double-buffered x/out
        tmp = tm_ * hpad * (4 + wb) + 3 * tm_ * opad * 4             # h (+cast copy), softmax
        return wts + act + tmp

    def tiled_vmem(tm_, th_):
        wts = 2 * ((kpad * th_ + th_ * opad) * wb + (th_ + opad) * 4)  # revolving chunks
        act = 2 * tm_ * kpad * wb + 2 * tm_ * opad * ob
        tmp = tm_ * opad * 4 + tm_ * th_ * (4 + wb) + 3 * tm_ * opad * 4
        return wts + act + tmp

    use_tiled = hidden_block is not None
    if not use_tiled:
        # Shrink tm by rebalancing the row grid, but never below the MXU-height floor.
        while tm > tm_floor and resident_vmem(tm) > budget:
            n_tiles += 1
            tm = max(tm_floor, _round_up(_cdiv(N, n_tiles), 8))
        use_tiled = resident_vmem(tm) > budget     # weights still too big -> tile hidden dim

    if use_tiled:
        if hidden_block is not None:
            th = int(hidden_block)
            assert th % 128 == 0 and hpad % th == 0, \
                "hidden_block must be a 128-multiple divisor of the padded hidden size"
        else:
            n_h = hpad // 128
            th = 128
            for nk in range(1, n_h + 1):           # fewest hidden chunks that fit the budget
                if n_h % nk:
                    continue
                cand = (n_h // nk) * 128
                if tiled_vmem(tm, cand) <= budget:
                    th = cand
                    break
        est = tiled_vmem(tm, th)
    else:
        est = resident_vmem(tm)

    npad = _round_up(N, tm)
    n_row = npad // tm
    vmem_limit = int(min(cap, max(int(est * 1.25) + (2 << 20), 16 << 20)))

    # Pad x only when its shape actually requires it (skip the extra HBM pass otherwise).
    if (npad, kpad) == (N, IN):
        xw = x if x.dtype == mdt else x.astype(mdt)
    else:
        xw = jnp.zeros((npad, kpad), mdt).at[:N, :IN].set(x.astype(mdt))

    out_shape = jax.ShapeDtypeStruct((npad, opad), out_dtype)

    if use_tiled:
        kern = functools.partial(_mlp_kernel_hidden_tiled, matmul_dtype=mdt,
                                 approx_recip=approx_softmax_recip)
        out = pl.pallas_call(
            kern, out_shape=out_shape, grid=(n_row, hpad // th),
            in_specs=[
                pl.BlockSpec((tm, kpad), lambda i, k: (i, 0)),   # x: resident across k
                pl.BlockSpec((kpad, th), lambda i, k: (0, k)),   # W1 hidden chunk
                pl.BlockSpec((1, th), lambda i, k: (0, k)),      # b1 hidden chunk
                pl.BlockSpec((th, opad), lambda i, k: (k, 0)),   # W2 hidden chunk
                pl.BlockSpec((1, opad), lambda i, k: (0, 0)),    # b2
            ],
            out_specs=pl.BlockSpec((tm, opad), lambda i, k: (i, 0)),
            scratch_shapes=[pltpu.VMEM((tm, opad), jnp.float32)],
            compiler_params=pltpu.CompilerParams(
                dimension_semantics=("parallel", "arbitrary"),
                vmem_limit_bytes=vmem_limit),
        )(xw, w1, b1, w2, b2)
        # TODO(synk): also tile opad for layers whose (th, opad) W2 chunk still overflows VMEM.
    else:
        kern = functools.partial(_mlp_kernel_resident, matmul_dtype=mdt,
                                 approx_recip=approx_softmax_recip)

        def call(single_buffer_residents):
            res_kw = ({"pipeline_mode": pl.Buffered(1)} if single_buffer_residents else {})
            in_specs = [
                pl.BlockSpec((tm, kpad), lambda i: (i, 0)),                 # x (pipelined)
                pl.BlockSpec((kpad, hpad), lambda i: (0, 0), **res_kw),     # W1 resident
                pl.BlockSpec((1, hpad), lambda i: (0, 0), **res_kw),        # b1 resident
                pl.BlockSpec((hpad, opad), lambda i: (0, 0), **res_kw),     # W2 resident
                pl.BlockSpec((1, opad), lambda i: (0, 0), **res_kw),        # b2 resident
            ]
            return pl.pallas_call(
                kern, out_shape=out_shape, grid=(n_row,),
                in_specs=in_specs,
                out_specs=pl.BlockSpec((tm, opad), lambda i: (i, 0)),
                compiler_params=pltpu.CompilerParams(
                    dimension_semantics=("parallel",),
                    vmem_limit_bytes=vmem_limit),
            )(xw, w1, b1, w2, b2)

        try:
            out = call(True)     # single-buffer the never-revolving weights (saves VMEM)
        except Exception:
            out = call(False)    # fallback if pipeline_mode=Buffered(1) is unsupported

    return out[:N, :OUT]


# ------------------- float64 host reference (ground truth) -------------------
def reference_forward_np(x, params):
    x64 = np.asarray(x, np.float64)
    w1 = np.asarray(params["w1"], np.float64)
    b1 = np.asarray(params["b1"], np.float64)
    w2 = np.asarray(params["w2"], np.float64)
    b2 = np.asarray(params["b2"], np.float64)
    h = np.maximum(x64 @ w1.T + b1, 0.0)
    logits = h @ w2.T + b2
    z = logits - logits.max(axis=1, keepdims=True)
    e = np.exp(z)
    return e / e.sum(axis=1, keepdims=True)


if __name__ == "__main__":
    key = jax.random.PRNGKey(0)
    kx, k1, k2, k3, k4, kx2, k5, k6, k7, k8 = jax.random.split(key, 10)

    # ---- Case 1: small MLP, resident-weight path (row-only grid, >= 2 steps) ----
    N, IN, HID, OUT = 16, 32, 16, 64
    params = {
        "w1": 0.1 * jax.random.normal(k1, (HID, IN), jnp.float32),   # fc1.weight
        "b1": 0.05 * jax.random.normal(k2, (HID,), jnp.float32),     # fc1.bias
        "w2": 0.1 * jax.random.normal(k3, (OUT, HID), jnp.float32),  # fc2.weight
        "b2": 0.05 * jax.random.normal(k4, (OUT,), jnp.float32),     # fc2.bias
    }
    x = jax.random.normal(kx, (N, IN), jnp.float32)
    ref = reference_forward_np(x, params)

    # f32 matmul path: validation only (not a perf path on v7x) — tight tolerance.
    packed_f32 = pack_params(params, matmul_dtype=jnp.float32)
    out_f32 = jax.block_until_ready(mlp_forward(x, packed_f32))
    np.testing.assert_allclose(np.asarray(out_f32), ref, rtol=0, atol=5e-3)

    # bf16 fast path (production default: bf16 MXU inputs, f32 accumulation/softmax).
    packed_bf16 = pack_params(params)                       # packed once, reused per call
    out_bf16 = jax.block_until_ready(mlp_forward(x, packed_bf16))
    np.testing.assert_allclose(np.asarray(out_bf16), ref, rtol=0, atol=2e-2)
    assert out_bf16.shape == (N, OUT)
    # Exact-division softmax -> rows sum to 1 within f32 rounding.
    np.testing.assert_allclose(np.asarray(out_bf16).sum(-1), 1.0, atol=1e-3)

    # ---- Case 2: larger hidden dim, forced hidden-tiled path, bf16 output ----
    N2, IN2, HID2, OUT2 = 40, 96, 384, 72
    params2 = {
        "w1": 0.05 * jax.random.normal(k5, (HID2, IN2), jnp.float32),
        "b1": 0.05 * jax.random.normal(k6, (HID2,), jnp.float32),
        "w2": 0.05 * jax.random.normal(k7, (OUT2, HID2), jnp.float32),
        "b2": 0.05 * jax.random.normal(k8, (OUT2,), jnp.float32),
    }
    x2 = jax.random.normal(kx2, (N2, IN2), jnp.float32)
    ref2 = reference_forward_np(x2, params2)

    packed2 = pack_params(params2)
    out2 = jax.block_until_ready(
        mlp_forward(x2, packed2, hidden_block=128, out_dtype=jnp.bfloat16))
    out2_f32 = np.asarray(out2.astype(jnp.float32))
    assert out2.shape == (N2, OUT2)
    np.testing.assert_allclose(out2_f32, ref2, rtol=0, atol=2e-2)
    np.testing.assert_allclose(out2_f32.sum(-1), 1.0, atol=1e-2)

    print("KERNEL_OK")
</pallas_src>

<mosaic_0001>
module attributes {stable_mosaic.version = 11 : i64} {
  func.func @_mlp_kernel_resident(%arg0: i32, %arg1: memref<8x128xf32, #tpu.memory_space<vmem>>, %arg2: memref<128x128xf32, #tpu.memory_space<vmem>>, %arg3: memref<1x128xf32, #tpu.memory_space<vmem>>, %arg4: memref<128x128xf32, #tpu.memory_space<vmem>>, %arg5: memref<1x128xf32, #tpu.memory_space<vmem>>, %arg6: memref<8x128xf32, #tpu.memory_space<vmem>>) attributes {dimension_semantics = [#tpu.dimension_semantics<parallel>], iteration_bounds = array<i64: 2>, scalar_prefetch = 0 : i64, scratch_operands = 0 : i64, tpu.core_type = #tpu.core_type<tc>, window_params = [{transform_indices = @transform_0, window_bounds = array<i64: 8, 128>}, {pipeline_mode = #tpu.pipeline_mode<synchronous>, transform_indices = @transform_1, window_bounds = array<i64: 128, 128>}, {pipeline_mode = #tpu.pipeline_mode<synchronous>, transform_indices = @transform_2, window_bounds = array<i64: 1, 128>}, {pipeline_mode = #tpu.pipeline_mode<synchronous>, transform_indices = @transform_3, window_bounds = array<i64: 128, 128>}, {pipeline_mode = #tpu.pipeline_mode<synchronous>, transform_indices = @transform_4, window_bounds = array<i64: 1, 128>}, {transform_indices = @transform_5, window_bounds = array<i64: 8, 128>}]} {
    %c0 = arith.constant 0 : index
    %c0_0 = arith.constant 0 : index
    %0 = vector.load %arg1[%c0, %c0_0] : memref<8x128xf32, #tpu.memory_space<vmem>>, vector<8x128xf32>
    %c0_1 = arith.constant 0 : index
    %c0_2 = arith.constant 0 : index
    %1 = vector.load %arg2[%c0_1, %c0_2] : memref<128x128xf32, #tpu.memory_space<vmem>>, vector<128x128xf32>
    %cst = arith.constant dense<0.000000e+00> : vector<8x128xf32>
    %2 = tpu.matmul %0, %1, %cst {dimension_numbers = #tpu.dot_dimension_numbers<[1], [0], [0], [1], [0, 0, 1, 1], [], []>} : vector<8x128xf32>, vector<128x128xf32>, vector<8x128xf32> -> vector<8x128xf32>
    %c0_3 = arith.constant 0 : index
    %c0_4 = arith.constant 0 : index
    %3 = vector.load %arg3[%c0_3, %c0_4] : memref<1x128xf32, #tpu.memory_space<vmem>>, vector<1x128xf32>
    %4 = vector.broadcast %3 : vector<1x128xf32> to vector<8x128xf32>
    %5 = arith.addf %2, %4 : vector<8x128xf32>
    %cst_5 = arith.constant 0.000000e+00 : f32
    %6 = vector.broadcast %cst_5 : f32 to vector<8x128xf32>
    %7 = arith.maximumf %5, %6 : vector<8x128xf32>
    %c0_6 = arith.constant 0 : index
    %c0_7 = arith.constant 0 : index
    %8 = vector.load %arg4[%c0_6, %c0_7] : memref<128x128xf32, #tpu.memory_space<vmem>>, vector<128x128xf32>
    %cst_8 = arith.constant dense<0.000000e+00> : vector<8x128xf32>
    %9 = tpu.matmul %7, %8, %cst_8 {dimension_numbers = #tpu.dot_dimension_numbers<[1], [0], [0], [1], [0, 0, 1, 1], [], []>} : vector<8x128xf32>, vector<128x128xf32>, vector<8x128xf32> -> vector<8x128xf32>
    %c0_9 = arith.constant 0 : index
    %c0_10 = arith.constant 0 : index
    %10 = vector.load %arg5[%c0_9, %c0_10] : memref<1x128xf32, #tpu.memory_space<vmem>>, vector<1x128xf32>
    %11 = vector.broadcast %10 : vector<1x128xf32> to vector<8x128xf32>
    %12 = arith.addf %9, %11 : vector<8x128xf32>
    %cst_11 = arith.constant dense<0xFF800000> : vector<8xf32>
    %13 = vector.multi_reduction <maximumf>, %12, %cst_11 [1] : vector<8x128xf32> to vector<8xf32>
    %14 = vector.shape_cast %13 : vector<8xf32> to vector<8x1xf32>
    %15 = vector.broadcast %14 : vector<8x1xf32> to vector<8x128xf32>
    %16 = arith.subf %12, %15 : vector<8x128xf32>
    %17 = math.exp %16 : vector<8x128xf32>
    %cst_12 = arith.constant dense<0.000000e+00> : vector<8xf32>
    %18 = vector.multi_reduction <add>, %17, %cst_12 [1] : vector<8x128xf32> to vector<8xf32>
    %19 = vector.shape_cast %18 : vector<8xf32> to vector<8x1xf32>
    %20 = vector.broadcast %19 : vector<8x1xf32> to vector<8x128xf32>
    %21 = arith.divf %17, %20 : vector<8x128xf32>
    %c0_13 = arith.constant 0 : index
    %c0_14 = arith.constant 0 : index
    %22 = vector.load %arg6[%c0_13, %c0_14] : memref<8x128xf32, #tpu.memory_space<vmem>>, vector<8x128xf32>
    tpu.vector_store %arg6[%c0_13, %c0_14], %21 {strides = array<i32>} : memref<8x128xf32, #tpu.memory_space<vmem>>, vector<8x128xf32>,
    return
  }
  func.func @transform_0(%arg0: i32) -> (i32, i32) {
    %c0_i32 = arith.constant 0 : i32
    %c0_i32_0 = arith.constant 0 : i32
    return %arg0, %c0_i32 : i32, i32
  }
  func.func @transform_1(%arg0: i32) -> (i32, i32) {
    %c0_i32 = arith.constant 0 : i32
    %c0_i32_0 = arith.constant 0 : i32
    %c0_i32_1 = arith.constant 0 : i32
    return %c0_i32, %c0_i32_0 : i32, i32
  }
  func.func @transform_2(%arg0: i32) -> (i32, i32) {
    %c0_i32 = arith.constant 0 : i32
    %c0_i32_0 = arith.constant 0 : i32
    %c0_i32_1 = arith.constant 0 : i32
    return %c0_i32, %c0_i32_0 : i32, i32
  }
  func.func @transform_3(%arg0: i32) -> (i32, i32) {
    %c0_i32 = arith.constant 0 : i32
    %c0_i32_0 = arith.constant 0 : i32
    %c0_i32_1 = arith.constant 0 : i32
    return %c0_i32, %c0_i32_0 : i32, i32
  }
  func.func @transform_4(%arg0: i32) -> (i32, i32) {
    %c0_i32 = arith.constant 0 : i32
    %c0_i32_0 = arith.constant 0 : i32
    %c0_i32_1 = arith.constant 0 : i32
    return %c0_i32, %c0_i32_0 : i32, i32
  }
  func.func @transform_5(%arg0: i32) -> (i32, i32) {
    %c0_i32 = arith.constant 0 : i32
    %c0_i32_0 = arith.constant 0 : i32
    return %arg0, %c0_i32 : i32, i32
  }
}

module attributes {stable_mosaic.version = 11 : i64} {
  func.func @_mlp_kernel_resident(%arg0: i32, %arg1: memref<8x128xf32, #tpu.memory_space<vmem>>, %arg2: memref<128x128xf32, #tpu.memory_space<vmem>>, %arg3: memref<1x128xf32, #tpu.memory_space<vmem>>, %arg4: memref<128x128xf32, #tpu.memory_space<vmem>>, %arg5: memref<1x128xf32, #tpu.memory_space<vmem>>, %arg6: memref<8x128xf32, #tpu.memory_space<vmem>>) attributes {dimension_semantics = [#tpu.dimension_semantics<parallel>], iteration_bounds = array<i64: 2>, scalar_prefetch = 0 : i64, scratch_operands = 0 : i64, tpu.core_type = #tpu.core_type<tc>, window_params = [{transform_indices = @transform_0, window_bounds = array<i64: 8, 128>}, {pipeline_mode = #tpu.pipeline_mode<synchronous>, transform_indices = @transform_1, window_bounds = array<i64: 128, 128>}, {pipeline_mode = #tpu.pipeline_mode<synchronous>, transform_indices = @transform_2, window_bounds = array<i64: 1, 128>}, {pipeline_mode = #tpu.pipeline_mode<synchronous>, transform_indices = @transform_3, window_bounds = array<i64: 128, 128>}, {pipeline_mode = #tpu.pipeline_mode<synchronous>, transform_indices = @transform_4, window_bounds = array<i64: 1, 128>}, {transform_indices = @transform_5, window_bounds = array<i64: 8, 128>}]} {
    %c0 = arith.constant 0 : index
    %c0_0 = arith.constant 0 : index
    %0 = vector.load %arg1[%c0, %c0_0] : memref<8x128xf32, #tpu.memory_space<vmem>>, vector<8x128xf32>
    %c0_1 = arith.constant 0 : index
    %c0_2 = arith.constant 0 : index
    %1 = vector.load %arg2[%c0_1, %c0_2] : memref<128x128xf32, #tpu.memory_space<vmem>>, vector<128x128xf32>
    %cst = arith.constant dense<0.000000e+00> : vector<8x128xf32>
    %2 = tpu.matmul %0, %1, %cst {dimension_numbers = #tpu.dot_dimension_numbers<[1], [0], [0], [1], [0, 0, 1, 1], [], []>} : vector<8x128xf32>, vector<128x128xf32>, vector<8x128xf32> -> vector<8x128xf32>
    %c0_3 = arith.constant 0 : index
    %c0_4 = arith.constant 0 : index
    %3 = vector.load %arg3[%c0_3, %c0_4] : memref<1x128xf32, #tpu.memory_space<vmem>>, vector<1x128xf32>
    %4 = vector.broadcast %3 : vector<1x128xf32> to vector<8x128xf32>
    %5 = arith.addf %2, %4 : vector<8x128xf32>
    %cst_5 = arith.constant 0.000000e+00 : f32
    %6 = vector.broadcast %cst_5 : f32 to vector<8x128xf32>
    %7 = arith.maximumf %5, %6 : vector<8x128xf32>
    %c0_6 = arith.constant 0 : index
    %c0_7 = arith.constant 0 : index
    %8 = vector.load %arg4[%c0_6, %c0_7] : memref<128x128xf32, #tpu.memory_space<vmem>>, vector<128x128xf32>
    %cst_8 = arith.constant dense<0.000000e+00> : vector<8x128xf32>
    %9 = tpu.matmul %7, %8, %cst_8 {dimension_numbers = #tpu.dot_dimension_numbers<[1], [0], [0], [1], [0, 0, 1, 1], [], []>} : vector<8x128xf32>, vector<128x128xf32>, vector<8x128xf32> -> vector<8x128xf32>
    %c0_9 = arith.constant 0 : index
    %c0_10 = arith.constant 0 : index
    %10 = vector.load %arg5[%c0_9, %c0_10] : memref<1x128xf32, #tpu.memory_space<vmem>>, vector<1x128xf32>
    %11 = vector.broadcast %10 : vector<1x128xf32> to vector<8x128xf32>
    %12 = arith.addf %9, %11 : vector<8x128xf32>
    %cst_11 = arith.constant dense<0xFF800000> : vector<8xf32>
    %13 = vector.multi_reduction <maximumf>, %12, %cst_11 [1] : vector<8x128xf32> to vector<8xf32>
    %14 = vector.shape_cast %13 : vector<8xf32> to vector<8x1xf32>
    %15 = vector.broadcast %14 : vector<8x1xf32> to vector<8x128xf32>
    %16 = arith.subf %12, %15 : vector<8x128xf32>
    %17 = math.exp %16 : vector<8x128xf32>
    %cst_12 = arith.constant dense<0.000000e+00> : vector<8xf32>
    %18 = vector.multi_reduction <add>, %17, %cst_12 [1] : vector<8x128xf32> to vector<8xf32>
    %19 = vector.shape_cast %18 : vector<8xf32> to vector<8x1xf32>
    %20 = vector.broadcast %19 : vector<8x1xf32> to vector<8x128xf32>
    %21 = arith.divf %17, %20 : vector<8x128xf32>
    %c0_13 = arith.constant 0 : index
    %c0_14 = arith.constant 0 : index
    %22 = vector.load %arg6[%c0_13, %c0_14] : memref<8x128xf32, #tpu.memory_space<vmem>>, vector<8x128xf32>
    tpu.vector_store %arg6[%c0_13, %c0_14], %21 {strides = array<i32>} : memref<8x128xf32, #tpu.memory_space<vmem>>, vector<8x128xf32>,
    return
  }
  func.func @transform_0(%arg0: i32) -> (i32, i32) {
    %c0_i32 = arith.constant 0 : i32
    %c0_i32_0 = arith.constant 0 : i32
    return %arg0, %c0_i32 : i32, i32
  }
  func.func @transform_1(%arg0: i32) -> (i32, i32) {
    %c0_i32 = arith.constant 0 : i32
    %c0_i32_0 = arith.constant 0 : i32
    %c0_i32_1 = arith.constant 0 : i32
    return %c0_i32, %c0_i32_0 : i32, i32
  }
  func.func @transform_2(%arg0: i32) -> (i32, i32) {
    %c0_i32 = arith.constant 0 : i32
    %c0_i32_0 = arith.constant 0 : i32
    %c0_i32_1 = arith.constant 0 : i32
    return %c0_i32, %c0_i32_0 : i32, i32
  }
  func.func @transform_3(%arg0: i32) -> (i32, i32) {
    %c0_i32 = arith.constant 0 : i32
    %c0_i32_0 = arith.constant 0 : i32
    %c0_i32_1 = arith.constant 0 : i32
    return %c0_i32, %c0_i32_0 : i32, i32
  }
  func.func @transform_4(%arg0: i32) -> (i32, i32) {
    %c0_i32 = arith.constant 0 : i32
    %c0_i32_0 = arith.constant 0 : i32
    %c0_i32_1 = arith.constant 0 : i32
    return %c0_i32, %c0_i32_0 : i32, i32
  }
  func.func @transform_5(%arg0: i32) -> (i32, i32) {
    %c0_i32 = arith.constant 0 : i32
    %c0_i32_0 = arith.constant 0 : i32
    return %arg0, %c0_i32 : i32, i32
  }
}

</mosaic_0001>

<bundles_post_ra>
// kernel: tpu_custom_call.1
= control target key start
LH: loop header
LB: loop body
LE: loop exit
PB: predicated region body
PF: predicated region fallthrough
CT: control target
= control target key end

     0   :  { %10 = vsyncpa [#allocation3], 0  ;;  %s1271_s0 = inlined_call_operand.hbm [shape: f32[16,128], index: 0, kind: input, shape index: {}]   ;;  %s1272_s1 = inlined_call_operand.hbm [shape: f32[128,128], index: 1, kind: input, shape index: {}]   ;;  %s1273_s2 = inlined_call_operand.vmem [shape: f32[1,128], index: 2, kind: input, shape index: {}]   ;;  %s1274_s3 = inlined_call_operand.hbm [shape: f32[128,128], index: 3, kind: input, shape index: {}]   ;;  %s1275_s4 = inlined_call_operand.vmem [shape: f32[1,128], index: 4, kind: input, shape index: {}]   ;;  %s1276_s5 = inlined_call_operand.hbm [shape: f32[16,128], index: 5, kind: output, shape index: {}]  }
   0x1   :  { %12 = vsyncpa [#allocation3 + $0x1], 0 }
   0x2   :  { %13 = vsyncpa [#allocation6], 0 }
   0x3   :  { %14 = vsyncpa [#allocation4], 0 }
   0x4   :  { %16 = vsyncpa [#allocation4 + $0x1], 0  ;;  %s1013_s18 = smov 0   ;;  %s1015_s19 = smov 0  }
   0x5   :  { %s1017_s20 = smov 0   ;;  %s1019_s21 = smov 0  }
   0x6 LB: > { %s1034_s22 = sadd.s32 4294967295, %s972_s21   ;;  %s570_s23 = sadd.s32 4294967294, %s972_s21   ;;  %s972_s21 = sphi %s1019_s21, %s1296_s21   ;;  %s968_s20 = sphi %s1017_s20, %s1295_s20   ;;  %s964_s19 = sphi %s1015_s19, %s1294_s19   ;;  %s960_s18 = sphi %s1013_s18, %s1293_s18  }
   0x7   : > { %p42_p0 = scmp.ne.s32.totalorder %s964_s19, %s960_s18  ;;  %p1277_p1 = scmp.eq.s32.totalorder %s1034_s22, 0 }
   0x8   : > { %p156_p3 = scmp.eq.s32.totalorder %s570_s23, 1  ;;  %p571_p5 = scmp.ge.s32.totalorder %s972_s21, 1 }
   0x9   : > { %p1043_p4 = por %p1277_p1, %p42_p0  ;;  %p163_p7 = scmp.lt.s32.totalorder %s972_s21, 3 }
   0xa   : > { %p1048_p6 = por %p156_p3, %p42_p0  ;;  %s974_s27 = smov [#allocation5]  }
   0xb   : > { %s1280_s24 = scalar_select %p1043_p4, 1, 0 }
   0xc   : > { %s1281_s25 = scalar_select %p1048_p6, 1, 0 }
   0xd   : > { %p1053_p8 = pnand %p571_p5, %p163_p7  ;;  %s175_s28 = sshll.u32 %s974_s27, 4  ;;  %s1057_s28 = int_to_ptr.vmem [resolvable:$true] %s175_s28 }
   0xe   : > { %s975_s30 = smov [#allocation7]   ;;  %s816_s9 = scalar_lea.hbm %s1272_s1, 2048 }
   0xf   : > { %p752_p9 = pneg %p1053_p8  ;;  %s191_s6 = sshll.u32 %s975_s30, 4  ;;  %s1068_s6 = int_to_ptr.vmem [resolvable:$true] %s191_s6 }
  0x10   : > { %p817_p12 = scmp.ne.s32.totalorder %s1272_s1, %s816_s9  ;;  %p823_p5 = scmp.lt.u32.totalorder %s816_s9, %s1272_s1 }
  0x11   : > { %p1064_p11 = pnand %p752_p9, %p1277_p1 }
  0x13   : > { %p818_p13 = pneg %p1064_p11 }
  0x15   : > { %p819_p0 = pnand %p818_p13, %p817_p12 }
  0x17   : > { %p820_p3 = pneg %p819_p0 }
  0x19   : > { %p825_p7 = pnand %p823_p5, %p820_p3 }
  0x1b   : > { %828 = shalt.err (!%p825_p7)
}
  0x1c   : > { %s829_s14 = scalar_lea.vmem %s1057_s28, 2048  ;;  %p837_p2 = scmp.lt.s32.totalorder %s1057_s28, %s1057_s28 }
  0x1d   : > { %p830_p9 = scmp.ne.s32.totalorder %s1057_s28, %s829_s14  ;;  %p838_p12 = scmp.lt.s32.totalorder %s829_s14, %s829_s14 }
  0x1f   : > { %p832_p10 = pnand %p830_p9, %p818_p13  ;;  %p839_p0 = por %p838_p12, %p837_p2 }
  0x21   : > { %p833_p1 = pneg %p832_p10 }
  0x23   : > { %p840_p6 = pnand %p839_p0, %p833_p1 }
  0x25   : > { %843 = shalt.err (!%p840_p6)
}
  0x26   : > { %s976_s15 = smov 128   ;;  %s977_s16 = smov 8  }
  0x27   : > { %755 = dma.hbm_to_vmem [thread:$0]  (!%p1064_p11), %s1272_s1, 2048, %s1057_s28, [#allocation6], %s976_s15, %s976_s15, %s977_s16  }
  0x28   : > { %s844_s7 = scalar_lea.hbm %s1274_s3, 2048 }
  0x29   : > { %p845_p2 = scmp.ne.s32.totalorder %s1274_s3, %s844_s7  ;;  %p851_p10 = scmp.lt.u32.totalorder %s844_s7, %s1274_s3 }
  0x2b   : > { %p847_p1 = pnand %p845_p2, %p818_p13 }
  0x2d   : > { %p848_p6 = pneg %p847_p1 }
  0x2f   : > { %p853_p3 = pnand %p851_p10, %p848_p6 }
  0x31   : > { %856 = shalt.err (!%p853_p3)
}
  0x32   : > { %s857_s28 = scalar_lea.vmem %s1068_s6, 2048  ;;  %p865_p12 = scmp.lt.s32.totalorder %s1068_s6, %s1068_s6 }
  0x33   : > { %p858_p5 = scmp.ne.s32.totalorder %s1068_s6, %s857_s28  ;;  %p866_p0 = scmp.lt.s32.totalorder %s857_s28, %s857_s28 }
  0x35   : > { %p860_p7 = pnand %p858_p5, %p818_p13  ;;  %p867_p2 = por %p866_p0, %p865_p12 }
  0x37   : > { %p861_p9 = pneg %p860_p7 }
  0x39   : > { %p868_p1 = pnand %p867_p2, %p861_p9 }
  0x3b   : > { %871 = shalt.err (!%p868_p1)
}
  0x3c   : > { %758 = dma.hbm_to_vmem [thread:$0]  (!%p1064_p11), %s1274_s3, 2048, %s1068_s6, [#allocation6], %s976_s15, %s976_s15, %s977_s16  }
  0x3d   : > { %s1123_s14 = sadd.s32 1, %s972_s21   ;;  %s29_s29 = sadd.s32 1, %s968_s20 }
  0x3e   : > { %s26_s17 = ssub.s32 %s972_s21, %s1123_s14  ;;  %p36_p13 = scmp.ne.s32.totalorder %s968_s20, %s964_s19 }
  0x3f   : > { %p27_p6 = scmp.eq.s32.totalorder %s26_s17, 0  ;;  %p37_p10 = scmp.eq.s32.totalorder %s972_s21, 0 }
  0x40   : > { %p1284_p3 = scmp.eq.s32.totalorder %s1034_s22, 1  ;;  %p769_p7 = scmp.lt.s32.totalorder %s972_s21, 2 }
  0x41   : > { %s1139_s27 = scalar_select %p27_p6, %s968_s20, %s29_s29  }
  0x42   : > { %p1133_p5 = por %p1284_p3, %p36_p13  ;;  %p38_p9 = por %p37_p10, %p36_p13 }
  0x43   : > { %s208_s30 = sand.u32 1, %s968_s20   ;;  %s576_s6 = sshll.u32 %s972_s21, 7 }
  0x44   : > { %s1285_s23 = scalar_select %p1133_p5, 1, 0 }
  0x45   : > { %s575_s7 = sshll.u32 %s208_s30, 3  ;;  %s1146_s8 = scalar_lea.hbm %s1271_s0, %s576_s6 }
  0x46   : > { %s212_s9 = scalar_lea.vmem [#allocation2], %s575_s7  ;;  %p1150_p11 = pnand %p769_p7, %p38_p9 }
  0x47   : > { %s219_s10 = sshll.u32 %s212_s9, 4  ;;  %s209_s28 = scalar_lea.sflag [#allocation3], %s208_s30  ;;  %s1148_s10 = int_to_ptr.vmem [resolvable:$true] %s219_s10 }
  0x48   : > { %s872_s12 = scalar_lea.hbm %s1146_s8, 128  ;;  %p874_p0 = pneg %p1150_p11 }
  0x49   : > { %p873_p12 = scmp.ne.s32.totalorder %s1146_s8, %s872_s12  ;;  %s877_s17 = scalar_lea.hbm %s1271_s0, 256 }
  0x4a   : > { %p878_p13 = scmp.lt.u32.totalorder %s1146_s8, %s1271_s0  ;;  %p879_p6 = scmp.lt.u32.totalorder %s877_s17, %s872_s12 }
  0x4b   : > { %p875_p2 = pnand %p874_p0, %p873_p12  ;;  %p881_p3 = scmp.lt.u32.totalorder %s872_s12, %s1146_s8 }
  0x4c   : > { %p880_p10 = por %p879_p6, %p878_p13 }
  0x4d   : > { %p876_p1 = pneg %p875_p2 }
  0x4e   : > { %p882_p7 = por %p881_p3, %p880_p10 }
  0x50   : > { %p883_p9 = pnand %p882_p7, %p876_p1 }
  0x52   : > { %886 = shalt.err (!%p883_p9)
}
  0x53   : > { %s887_s30 = scalar_lea.vmem %s1148_s10, 128  ;;  %s978_s15 = smov [#allocation2]  }
  0x54   : > { %p888_p12 = scmp.ne.s32.totalorder %s1148_s10, %s887_s30  ;;  %s892_s16 = sshll.u32 %s978_s15, 4  ;;  %s893_s16 = int_to_ptr.vmem [resolvable:$false] %s892_s16 }
  0x55   : > { %s894_s9 = scalar_lea.vmem %s893_s16, 256  ;;  %p895_p4 = scmp.lt.s32.totalorder %s1148_s10, %s893_s16 }
  0x56   : > { %p890_p2 = pnand %p888_p12, %p874_p0  ;;  %p896_p13 = scmp.lt.s32.totalorder %s894_s9, %s887_s30 }
  0x58   : > { %p891_p5 = pneg %p890_p2  ;;  %p897_p6 = por %p896_p13, %p895_p4 }
  0x5a   : > { %p898_p10 = pnand %p897_p6, %p891_p5 }
  0x5c   : > { %901 = shalt.err (!%p898_p10)
}
  0x5d   : > { %762 = dma.hbm_to_vmem [thread:$0]  (!%p1150_p11), %s1146_s8, 128, %s1148_s10, %s209_s28  }
  0x5e   : > { %228 = sbr.rel (%p1053_p8) target bundleno = 895 (0x37f), region = 40  ;;  %s1182_s12 = sand.u32 (!%p1053_p8), 1, %s964_s19  }
  0x5f   : > { %s578_s13 = sshll.u32 (!%p1053_p8), %s1182_s12, 3  ;;  %s231_s29 = scalar_lea.sflag (!%p1053_p8), [#allocation3], %s1182_s12 }
  0x60   : > { %s1188_s17 = scalar_lea.vmem (!%p1053_p8), [#allocation2], %s578_s13  ;;  %p1287_p4 = scmp.ne.s32.totalorder (!%p1053_p8), %s1280_s24, 0 }
  0x65   : > { %947 = dma.done.wait (%p1287_p4), %s231_s29, 128  }
  0x66   : > { %949 = vsyncadd (%p1287_p4), %s231_s29, 4294967168  ;;  %p1288_p5 = scmp.eq.s32.totalorder %s1034_s22, 0 }
  0x68   : > { %951 = dma.done.wait (%p1288_p5), [#allocation6], 4096   ;;  %p1289_p8 = pmov %p1288_p5 }
  0x69   : > { %v979_v0 = vmov 0.0|0.0   ;;  %vm980_vm0 = vmmov 0   ;;  %v981_v1 = vmov 0.0   ;;  %v270_v2 = vld [vmem:[#allocation5] sm:$0xff]  ;;  %v271_v3 = vld [vmem:[#allocation5 + $0x8] sm:$0xff]  ;;  %v272_v4 = vld [vmem:[#allocation5 + $0x10] sm:$0xff] }
  0x6a   : > { %953 = vsyncadd (%p1289_p8), [#allocation6], 4294963200  ;;  %692 = vmatprep.subr.bf16.mxu0 %v979_v0  ;;  %654 = vmatprep.mubr.msk.f32.mxu0 %vm980_vm0, %v981_v1  ;;  %v693_v5 = vpack.c.bf16 %v271_v3, %v270_v2  ;;  %v273_v6 = vld [vmem:[#allocation5 + $0x18] sm:$0xff]  ;;  %v274_v8 = vld [vmem:[#allocation5 + $0x20] sm:$0xff]  ;;  %s585_s11 = sshll.u32 %s1034_s22, 7  ;;  %s268_s28 = scalar_lea.vmem [#allocation8], %s578_s13 }
  0x6b   : > { %716 = vmatprep.subr.bf16.mxu1 %v979_v0  ;;  %689 = vmatprep.mubr.msk.f32.mxu1 %vm980_vm0, %v981_v1  ;;  %v696_v7 = vpack.c.bf16 %v273_v6, %v272_v4  ;;  %v275_v9 = vld [vmem:[#allocation5 + $0x28] sm:$0xff]  ;;  %v364_v10 = vld [vmem:[#allocation7] sm:$0xff]  ;;  %v366_v12 = vld [vmem:[#allocation7 + $0x10] sm:$0xff]  ;;  %s481_s7 = sshll.u32 %s268_s28, 4  ;;  %s1227_s15 = scalar_lea.hbm %s1276_s5, %s585_s11  ;;  %s1229_s7 = int_to_ptr.vmem [resolvable:$true] %s481_s7 }
  0x6c   : > { %694 = vmatpush3.bf16.msra.mxu0 %v693_v5  ;;  %v365_v11 = vld [vmem:[#allocation7 + $0x8] sm:$0xff]  ;;  %v367_v13 = vld [vmem:[#allocation7 + $0x18] sm:$0xff]  ;;  %v699_v14 = vpack.c.bf16 %v275_v9, %v274_v8  ;;  %v276_v16 = vld [vmem:[#allocation5 + $0x30] sm:$0xff]  ;;  %s468_s16 = scalar_lea.sflag [#allocation4], %s1182_s12  ;;  %s902_s9 = scalar_lea.vmem %s1229_s7, 128 }
  0x6d   : > { %695 = vmatprep.subr.bf16.mxu0 %v979_v0  ;;  %v717_v15 = vpack.c.bf16 %v365_v11, %v364_v10  ;;  %v277_v17 = vld [vmem:[#allocation5 + $0x38] sm:$0xff]  ;;  %v720_v18 = vpack.c.bf16 %v367_v13, %v366_v12  ;;  %v368_v19 = vld [vmem:[#allocation7 + $0x20] sm:$0xff]  ;;  %v369_v20 = vld [vmem:[#allocation7 + $0x28] sm:$0xff]  ;;  %p903_p11 = scmp.ne.s32.totalorder %s1229_s7, %s902_s9  ;;  %p1290_p0 = scmp.ne.s32.totalorder %s1285_s23, 0 }
  0x6e   : > { %v702_v21 = vpack.c.bf16 %v277_v17, %v276_v16  ;;  %v278_v22 = vld [vmem:[#allocation5 + $0x40] sm:$0xff]  ;;  %v279_v23 = vld [vmem:[#allocation5 + $0x48] sm:$0xff]  ;;  %v723_v24 = vpack.c.bf16 %v369_v20, %v368_v19  ;;  %v370_v25 = vld [vmem:[#allocation7 + $0x30] sm:$0xff]  ;;  %s982_s22 = smov [#allocation8]  }
  0x6f   : > { %718 = vmatpush3.bf16.msra.mxu1 %v717_v15  ;;  %v371_v26 = vld [vmem:[#allocation7 + $0x38] sm:$0xff]  ;;  %v705_v27 = vpack.c.bf16 %v279_v23, %v278_v22  ;;  %v280_v28 = vld [vmem:[#allocation5 + $0x50] sm:$0xff]  ;;  %v372_v31 = vld [vmem:[#allocation7 + $0x40] sm:$0xff]  ;;  %p904_p1 = pnand %p903_p11, %p1290_p0  ;;  %s906_s13 = sshll.u32 %s982_s22, 4  ;;  %s907_s13 = int_to_ptr.vmem [resolvable:$false] %s906_s13 }
  0x70   : > { %697 = vmatpush3.bf16.msra.mxu0 %v696_v7  ;;  %719 = vmatprep.subr.bf16.mxu1 %v979_v0  ;;  %v281_v29 = vld [vmem:[#allocation5 + $0x58] sm:$0xff]  ;;  %v726_v30 = vpack.c.bf16 %v371_v26, %v370_v25  ;;  %v373_v32 = vld [vmem:[#allocation7 + $0x48] sm:$0xff]  ;;  %v282_v34 = vld [vmem:[#allocation5 + $0x60] sm:$0xff]  ;;  %s908_s29 = scalar_lea.vmem %s907_s13, 256  ;;  %p909_p7 = scmp.lt.s32.totalorder %s1229_s7, %s907_s13 }
  0x71   : > { %698 = vmatprep.subr.bf16.mxu0 %v979_v0  ;;  %v708_v33 = vpack.c.bf16 %v281_v29, %v280_v28  ;;  %v283_v35 = vld [vmem:[#allocation5 + $0x68] sm:$0xff]  ;;  %v729_v36 = vpack.c.bf16 %v373_v32, %v372_v31  ;;  %v374_v37 = vld [vmem:[#allocation7 + $0x50] sm:$0xff]  ;;  %v375_v38 = vld [vmem:[#allocation7 + $0x58] sm:$0xff]  ;;  %p905_p3 = pneg %p904_p1  ;;  %p910_p9 = scmp.lt.s32.totalorder %s908_s29, %s902_s9 }
  0x72   : > { %v711_v39 = vpack.c.bf16 %v283_v35, %v282_v34  ;;  %v284_v40 = vld [vmem:[#allocation5 + $0x70] sm:$0xff]  ;;  %v285_v41 = vld [vmem:[#allocation5 + $0x78] sm:$0xff]  ;;  %v732_v42 = vpack.c.bf16 %v375_v38, %v374_v37  ;;  %v376_v43 = vld [vmem:[#allocation7 + $0x60] sm:$0xff] }
  0x73   : > { %721 = vmatpush3.bf16.msra.mxu1 %v720_v18  ;;  %v377_v44 = vld [vmem:[#allocation7 + $0x68] sm:$0xff]  ;;  %v714_v45 = vpack.c.bf16 %v285_v41, %v284_v40  ;;  %v269_v47 = vld [vmem:[%s1188_s17] sm:$0xff]  ;;  %p911_p12 = por %p910_p9, %p909_p7 }
  0x74   : > { %700 = vmatpush3.bf16.msra.mxu0 %v699_v14  ;;  %722 = vmatprep.subr.bf16.mxu1 %v979_v0  ;;  %v735_v46 = vpack.c.bf16 %v377_v44, %v376_v43  ;;  %v378_v48 = vld [vmem:[#allocation7 + $0x70] sm:$0xff]  ;;  %v379_v49 = vld [vmem:[#allocation7 + $0x78] sm:$0xff] }
  0x75   : > { %701 = vmatprep.subr.bf16.mxu0 %v979_v0  ;;  %v738_v50 = vpack.c.bf16 %v379_v49, %v378_v48  ;;  %v582_v51 = vld [vmem:[%s1273_s2] ss:$0 sm:$0xff]  ;;  %p912_p2 = pnand %p911_p12, %p905_p3 }
  0x76   : > { %v583_v56 = vld [vmem:[%s1275_s4] ss:$0 sm:$0xff] }
  0x77   : > { %724 = vmatpush3.bf16.msra.mxu1 %v723_v24 }
  0x78   : > { %703 = vmatpush3.bf16.msra.mxu0 %v702_v21  ;;  %725 = vmatprep.subr.bf16.mxu1 %v979_v0 }
  0x79   : > { %704 = vmatprep.subr.bf16.mxu0 %v979_v0 }
  0x7b   : > { %727 = vmatpush3.bf16.msra.mxu1 %v726_v30 }
  0x7c   : > { %706 = vmatpush3.bf16.msra.mxu0 %v705_v27  ;;  %728 = vmatprep.subr.bf16.mxu1 %v979_v0 }
  0x7d   : > { %707 = vmatprep.subr.bf16.mxu0 %v979_v0 }
  0x7f   : > { %730 = vmatpush3.bf16.msra.mxu1 %v729_v36 }
  0x80   : > { %709 = vmatpush3.bf16.msra.mxu0 %v708_v33  ;;  %731 = vmatprep.subr.bf16.mxu1 %v979_v0 }
  0x81   : > { %710 = vmatprep.subr.bf16.mxu0 %v979_v0 }
  0x83   : > { %733 = vmatpush3.bf16.msra.mxu1 %v732_v42 }
  0x84   : > { %712 = vmatpush3.bf16.msra.mxu0 %v711_v39  ;;  %734 = vmatprep.subr.bf16.mxu1 %v979_v0 }
  0x85   : > { %713 = vmatprep.subr.bf16.mxu0 %v979_v0 }
  0x87   : > { %736 = vmatpush3.bf16.msra.mxu1 %v735_v46 }
  0x88   : > { %715 = vmatpush3.bf16.msra.mxu0 %v714_v45  ;;  %737 = vmatprep.subr.bf16.mxu1 %v979_v0 }
  0x8b   : > { %655 = vmatmul.mubr.f32.vlgmr.msra.gmra.mrb[0].mxu0 %v269_v47  ;;  %739 = vmatpush3.bf16.msra.mxu1 %v738_v50 }
 0x15e   : > { %v359_v52 = vpop.f32.mrb[0].mxu0 }
 0x15f   : > { %v360_v53 = vadd.f32 %v582_v51, %v359_v52  ;;  %v656_v54 = vpop.f32.mrb[1].mxu0 }
 0x161   : > { %v363_v55 = vmax.f32 %v360_v53, 0.0 }
 0x163   : > { %690 = vmatmul.mubr.f32.vlgmr.msra.gmra.mrb[0].mxu1 %v363_v55 }
 0x236   : > { %v453_v57 = vpop.f32.mrb[0].mxu1 }
 0x237   : > { %v454_v58 = vadd.f32 %v583_v56, %v453_v57  ;;  %v691_v59 = vpop.f32.mrb[1].mxu1 }
 0x239   : > { %457 = vmax.xlane.f32.xlu0 %v454_v58 }
 0x2c6   : > { %v458_v60 = vpop.xlane.xlu0 %457 }
 0x2c7   : > { %v459_v61 = vsub.f32 %v454_v58, %v458_v60 }
 0x2c9   : > { %v460_v62 = vmul.f32 1.442695, %v459_v61 }
 0x2cb   : > { %812 = vpow2.f32 %v460_v62 }
 0x2d5   : > { %v813_v63 = vpop.eup %812 }
 0x2d6   : > { %462 = vadd.xlane.f32.xlu0 %v813_v63 }
 0x363   : > { %v463_v0 = vpop.xlane.xlu0 %462 }
 0x364   : > { %814 = vrcp.f32 %v463_v0 }
 0x36e   : > { %v815_v1 = vpop.eup %814 }
 0x36f   : > { %v465_v2 = vmul.f32 %v815_v1, %v813_v63 }
 0x371   : > { %466 = vst [vmem:[%s268_s28] sm:$0xff] %v465_v2 }
 0x372   : > { %915 = shalt.err (!%p912_p2)
}
 0x373   : > { %s916_s12 = scalar_lea.hbm %s1227_s15, 128  ;;  %s920_s26 = scalar_lea.hbm %s1276_s5, 256 }
 0x374   : > { %p917_p13 = scmp.ne.s32.totalorder %s1227_s15, %s916_s12  ;;  %p921_p4 = scmp.lt.u32.totalorder %s1227_s15, %s1276_s5 }
 0x375   : > { %p922_p5 = scmp.lt.u32.totalorder %s920_s26, %s916_s12  ;;  %p924_p11 = scmp.lt.u32.totalorder %s916_s12, %s1227_s15 }
 0x376   : > { %p918_p6 = pnand %p917_p13, %p1290_p0 }
 0x377   : > { %p923_p8 = por %p922_p5, %p921_p4 }
 0x378   : > { %p919_p10 = pneg %p918_p6 }
 0x379   : > { %p925_p1 = por %p924_p11, %p923_p8 }
 0x37b   : > { %p926_p3 = pnand %p925_p1, %p919_p10 }
 0x37d   : > { %929 = shalt.err (!%p926_p3)
}
 0x37e   : > { %750 = dma.vmem_to_hbm [thread:$0]  (%p1290_p0), %s1229_s7, 128, %s1227_s15, %s468_s16  }
 0x37f PF: > { %s493_s11 = sand.u32 1, %s960_s18   ;;  %p1291_p7 = scmp.ne.s32.totalorder %s1281_s25, 0 }
 0x380   : > { %p1292_p9 = scmp.ge.s32.totalorder %s972_s21, 2  ;;  %s494_s28 = scalar_lea.sflag [#allocation4], %s493_s11 }
 0x382   : > { %p764_p12 = pnand %p1292_p9, %p1291_p7 }
 0x384   : > { %955 = dma.done.wait (!%p764_p12), %s494_s28, 128  }
 0x385   : > { %957 = vsyncadd (!%p764_p12), %s494_s28, 4294967168  ;;  %p19_p2 = scmp.ge.s32.totalorder %s1123_s14, 4   ;;  %s1293_s18 = smov %s964_s19 }
 0x386   : > { %s1294_s19 = smov %s968_s20  ;;  %s1295_s20 = smov %s1139_s27 }
 0x387   : > { %s1296_s21 = smov %s1123_s14  ;;  %21 = sbr.rel (!%p19_p2) target bundleno = 6 (0x6), region = 93 }
 0x38e   :  { %499 = vsyncpa [#allocation3], 1 }
 0x38f   :  { %501 = vsyncpa [#allocation3 + $0x1], 1 }
 0x390   :  { %502 = vsyncpa [#allocation6], 1 }
 0x391   :  { %503 = vsyncpa [#allocation4], 1 }
 0x392   :  { %505 = vsyncpa [#allocation4 + $0x1], 1 }

// kernel: tpu_custom_call.1
= control target key start
LH: loop header
LB: loop body
LE: loop exit
PB: predicated region body
PF: predicated region fallthrough
CT: control target
= control target key end

     0   :  { %10 = vsyncpa [#allocation3], 0  ;;  %s1271_s0 = inlined_call_operand.hbm [shape: f32[16,128], index: 0, kind: input, shape index: {}]   ;;  %s1272_s1 = inlined_call_operand.hbm [shape: f32[128,128], index: 1, kind: input, shape index: {}]   ;;  %s1273_s2 = inlined_call_operand.vmem [shape: f32[1,128], index: 2, kind: input, shape index: {}]   ;;  %s1274_s3 = inlined_call_operand.hbm [shape: f32[128,128], index: 3, kind: input, shape index: {}]   ;;  %s1275_s4 = inlined_call_operand.vmem [shape: f32[1,128], index: 4, kind: input, shape index: {}]   ;;  %s1276_s5 = inlined_call_operand.hbm [shape: f32[16,128], index: 5, kind: output, shape index: {}]  }
   0x1   :  { %12 = vsyncpa [#allocation3 + $0x1], 0 }
   0x2   :  { %13 = vsyncpa [#allocation6], 0 }
   0x3   :  { %14 = vsyncpa [#allocation4], 0 }
   0x4   :  { %16 = vsyncpa [#allocation4 + $0x1], 0  ;;  %s1013_s18 = smov 0   ;;  %s1015_s19 = smov 0  }
   0x5   :  { %s1017_s20 = smov 0   ;;  %s1019_s21 = smov 0  }
   0x6 LB: > { %s1034_s22 = sadd.s32 4294967295, %s972_s21   ;;  %s570_s23 = sadd.s32 4294967294, %s972_s21   ;;  %s972_s21 = sphi %s1019_s21, %s1296_s21   ;;  %s968_s20 = sphi %s1017_s20, %s1295_s20   ;;  %s964_s19 = sphi %s1015_s19, %s1294_s19   ;;  %s960_s18 = sphi %s1013_s18, %s1293_s18  }
   0x7   : > { %p42_p0 = scmp.ne.s32.totalorder %s964_s19, %s960_s18  ;;  %p1277_p1 = scmp.eq.s32.totalorder %s1034_s22, 0 }
   0x8   : > { %p156_p3 = scmp.eq.s32.totalorder %s570_s23, 1  ;;  %p571_p5 = scmp.ge.s32.totalorder %s972_s21, 1 }
   0x9   : > { %p1043_p4 = por %p1277_p1, %p42_p0  ;;  %p163_p7 = scmp.lt.s32.totalorder %s972_s21, 3 }
   0xa   : > { %p1048_p6 = por %p156_p3, %p42_p0  ;;  %s974_s27 = smov [#allocation5]  }
   0xb   : > { %s1280_s24 = scalar_select %p1043_p4, 1, 0 }
   0xc   : > { %s1281_s25 = scalar_select %p1048_p6, 1, 0 }
   0xd   : > { %p1053_p8 = pnand %p571_p5, %p163_p7  ;;  %s175_s28 = sshll.u32 %s974_s27, 4  ;;  %s1057_s28 = int_to_ptr.vmem [resolvable:$true] %s175_s28 }
   0xe   : > { %s975_s30 = smov [#allocation7]   ;;  %s816_s9 = scalar_lea.hbm %s1272_s1, 2048 }
   0xf   : > { %p752_p9 = pneg %p1053_p8  ;;  %s191_s6 = sshll.u32 %s975_s30, 4  ;;  %s1068_s6 = int_to_ptr.vmem [resolvable:$true] %s191_s6 }
  0x10   : > { %p817_p12 = scmp.ne.s32.totalorder %s1272_s1, %s816_s9  ;;  %p823_p5 = scmp.lt.u32.totalorder %s816_s9, %s1272_s1 }
  0x11   : > { %p1064_p11 = pnand %p752_p9, %p1277_p1 }
  0x13   : > { %p818_p13 = pneg %p1064_p11 }
  0x15   : > { %p819_p0 = pnand %p818_p13, %p817_p12 }
  0x17   : > { %p820_p3 = pneg %p819_p0 }
  0x19   : > { %p825_p7 = pnand %p823_p5, %p820_p3 }
  0x1b   : > { %828 = shalt.err (!%p825_p7)
}
  0x1c   : > { %s829_s14 = scalar_lea.vmem %s1057_s28, 2048  ;;  %p837_p2 = scmp.lt.s32.totalorder %s1057_s28, %s1057_s28 }
  0x1d   : > { %p830_p9 = scmp.ne.s32.totalorder %s1057_s28, %s829_s14  ;;  %p838_p12 = scmp.lt.s32.totalorder %s829_s14, %s829_s14 }
  0x1f   : > { %p832_p10 = pnand %p830_p9, %p818_p13  ;;  %p839_p0 = por %p838_p12, %p837_p2 }
  0x21   : > { %p833_p1 = pneg %p832_p10 }
  0x23   : > { %p840_p6 = pnand %p839_p0, %p833_p1 }
  0x25   : > { %843 = shalt.err (!%p840_p6)
}
  0x26   : > { %s976_s15 = smov 128   ;;  %s977_s16 = smov 8  }
  0x27   : > { %755 = dma.hbm_to_vmem [thread:$0]  (!%p1064_p11), %s1272_s1, 2048, %s1057_s28, [#allocation6], %s976_s15, %s976_s15, %s977_s16  }
  0x28   : > { %s844_s7 = scalar_lea.hbm %s1274_s3, 2048 }
  0x29   : > { %p845_p2 = scmp.ne.s32.totalorder %s1274_s3, %s844_s7  ;;  %p851_p10 = scmp.lt.u32.totalorder %s844_s7, %s1274_s3 }
  0x2b   : > { %p847_p1 = pnand %p845_p2, %p818_p13 }
  0x2d   : > { %p848_p6 = pneg %p847_p1 }
  0x2f   : > { %p853_p3 = pnand %p851_p10, %p848_p6 }
  0x31   : > { %856 = shalt.err (!%p853_p3)
}
  0x32   : > { %s857_s28 = scalar_lea.vmem %s1068_s6, 2048  ;;  %p865_p12 = scmp.lt.s32.totalorder %s1068_s6, %s1068_s6 }
  0x33   : > { %p858_p5 = scmp.ne.s32.totalorder %s1068_s6, %s857_s28  ;;  %p866_p0 = scmp.lt.s32.totalorder %s857_s28, %s857_s28 }
  0x35   : > { %p860_p7 = pnand %p858_p5, %p818_p13  ;;  %p867_p2 = por %p866_p0, %p865_p12 }
  0x37   : > { %p861_p9 = pneg %p860_p7 }
  0x39   : > { %p868_p1 = pnand %p867_p2, %p861_p9 }
  0x3b   : > { %871 = shalt.err (!%p868_p1)
}
  0x3c   : > { %758 = dma.hbm_to_vmem [thread:$0]  (!%p1064_p11), %s1274_s3, 2048, %s1068_s6, [#allocation6], %s976_s15, %s976_s15, %s977_s16  }
  0x3d   : > { %s1123_s14 = sadd.s32 1, %s972_s21   ;;  %s29_s29 = sadd.s32 1, %s968_s20 }
  0x3e   : > { %s26_s17 = ssub.s32 %s972_s21, %s1123_s14  ;;  %p36_p13 = scmp.ne.s32.totalorder %s968_s20, %s964_s19 }
  0x3f   : > { %p27_p6 = scmp.eq.s32.totalorder %s26_s17, 0  ;;  %p37_p10 = scmp.eq.s32.totalorder %s972_s21, 0 }
  0x40   : > { %p1284_p3 = scmp.eq.s32.totalorder %s1034_s22, 1  ;;  %p769_p7 = scmp.lt.s32.totalorder %s972_s21, 2 }
  0x41   : > { %s1139_s27 = scalar_select %p27_p6, %s968_s20, %s29_s29  }
  0x42   : > { %p1133_p5 = por %p1284_p3, %p36_p13  ;;  %p38_p9 = por %p37_p10, %p36_p13 }
  0x43   : > { %s208_s30 = sand.u32 1, %s968_s20   ;;  %s576_s6 = sshll.u32 %s972_s21, 7 }
  0x44   : > { %s1285_s23 = scalar_select %p1133_p5, 1, 0 }
  0x45   : > { %s575_s7 = sshll.u32 %s208_s30, 3  ;;  %s1146_s8 = scalar_lea.hbm %s1271_s0, %s576_s6 }
  0x46   : > { %s212_s9 = scalar_lea.vmem [#allocation2], %s575_s7  ;;  %p1150_p11 = pnand %p769_p7, %p38_p9 }
  0x47   : > { %s219_s10 = sshll.u32 %s212_s9, 4  ;;  %s209_s28 = scalar_lea.sflag [#allocation3], %s208_s30  ;;  %s1148_s10 = int_to_ptr.vmem [resolvable:$true] %s219_s10 }
  0x48   : > { %s872_s12 = scalar_lea.hbm %s1146_s8, 128  ;;  %p874_p0 = pneg %p1150_p11 }
  0x49   : > { %p873_p12 = scmp.ne.s32.totalorder %s1146_s8, %s872_s12  ;;  %s877_s17 = scalar_lea.hbm %s1271_s0, 256 }
  0x4a   : > { %p878_p13 = scmp.lt.u32.totalorder %s1146_s8, %s1271_s0  ;;  %p879_p6 = scmp.lt.u32.totalorder %s877_s17, %s872_s12 }
  0x4b   : > { %p875_p2 = pnand %p874_p0, %p873_p12  ;;  %p881_p3 = scmp.lt.u32.totalorder %s872_s12, %s1146_s8 }
  0x4c   : > { %p880_p10 = por %p879_p6, %p878_p13 }
  0x4d   : > { %p876_p1 = pneg %p875_p2 }
  0x4e   : > { %p882_p7 = por %p881_p3, %p880_p10 }
  0x50   : > { %p883_p9 = pnand %p882_p7, %p876_p1 }
  0x52   : > { %886 = shalt.err (!%p883_p9)
}
  0x53   : > { %s887_s30 = scalar_lea.vmem %s1148_s10, 128  ;;  %s978_s15 = smov [#allocation2]  }
  0x54   : > { %p888_p12 = scmp.ne.s32.totalorder %s1148_s10, %s887_s30  ;;  %s892_s16 = sshll.u32 %s978_s15, 4  ;;  %s893_s16 = int_to_ptr.vmem [resolvable:$false] %s892_s16 }
  0x55   : > { %s894_s9 = scalar_lea.vmem %s893_s16, 256  ;;  %p895_p4 = scmp.lt.s32.totalorder %s1148_s10, %s893_s16 }
  0x56   : > { %p890_p2 = pnand %p888_p12, %p874_p0  ;;  %p896_p13 = scmp.lt.s32.totalorder %s894_s9, %s887_s30 }
  0x58   : > { %p891_p5 = pneg %p890_p2  ;;  %p897_p6 = por %p896_p13, %p895_p4 }
  0x5a   : > { %p898_p10 = pnand %p897_p6, %p891_p5 }
  0x5c   : > { %901 = shalt.err (!%p898_p10)
}
  0x5d   : > { %762 = dma.hbm_to_vmem [thread:$0]  (!%p1150_p11), %s1146_s8, 128, %s1148_s10, %s209_s28  }
  0x5e   : > { %228 = sbr.rel (%p1053_p8) target bundleno = 895 (0x37f), region = 40  ;;  %s1182_s12 = sand.u32 (!%p1053_p8), 1, %s964_s19  }
  0x5f   : > { %s578_s13 = sshll.u32 (!%p1053_p8), %s1182_s12, 3  ;;  %s231_s29 = scalar_lea.sflag (!%p1053_p8), [#allocation3], %s1182_s12 }
  0x60   : > { %s1188_s17 = scalar_lea.vmem (!%p1053_p8), [#allocation2], %s578_s13  ;;  %p1287_p4 = scmp.ne.s32.totalorder (!%p1053_p8), %s1280_s24, 0 }
  0x65   : > { %947 = dma.done.wait (%p1287_p4), %s231_s29, 128  }
  0x66   : > { %949 = vsyncadd (%p1287_p4), %s231_s29, 4294967168  ;;  %p1288_p5 = scmp.eq.s32.totalorder %s1034_s22, 0 }
  0x68   : > { %951 = dma.done.wait (%p1288_p5), [#allocation6], 4096   ;;  %p1289_p8 = pmov %p1288_p5 }
  0x69   : > { %v979_v0 = vmov 0.0|0.0   ;;  %vm980_vm0 = vmmov 0   ;;  %v981_v1 = vmov 0.0   ;;  %v270_v2 = vld [vmem:[#allocation5] sm:$0xff]  ;;  %v271_v3 = vld [vmem:[#allocation5 + $0x8] sm:$0xff]  ;;  %v272_v4 = vld [vmem:[#allocation5 + $0x10] sm:$0xff] }
  0x6a   : > { %953 = vsyncadd (%p1289_p8), [#allocation6], 4294963200  ;;  %692 = vmatprep.subr.bf16.mxu0 %v979_v0  ;;  %654 = vmatprep.mubr.msk.f32.mxu0 %vm980_vm0, %v981_v1  ;;  %v693_v5 = vpack.c.bf16 %v271_v3, %v270_v2  ;;  %v273_v6 = vld [vmem:[#allocation5 + $0x18] sm:$0xff]  ;;  %v274_v8 = vld [vmem:[#allocation5 + $0x20] sm:$0xff]  ;;  %s585_s11 = sshll.u32 %s1034_s22, 7  ;;  %s268_s28 = scalar_lea.vmem [#allocation8], %s578_s13 }
  0x6b   : > { %716 = vmatprep.subr.bf16.mxu1 %v979_v0  ;;  %689 = vmatprep.mubr.msk.f32.mxu1 %vm980_vm0, %v981_v1  ;;  %v696_v7 = vpack.c.bf16 %v273_v6, %v272_v4  ;;  %v275_v9 = vld [vmem:[#allocation5 + $0x28] sm:$0xff]  ;;  %v364_v10 = vld [vmem:[#allocation7] sm:$0xff]  ;;  %v366_v12 = vld [vmem:[#allocation7 + $0x10] sm:$0xff]  ;;  %s481_s7 = sshll.u32 %s268_s28, 4  ;;  %s1227_s15 = scalar_lea.hbm %s1276_s5, %s585_s11  ;;  %s1229_s7 = int_to_ptr.vmem [resolvable:$true] %s481_s7 }
  0x6c   : > { %694 = vmatpush3.bf16.msra.mxu0 %v693_v5  ;;  %v365_v11 = vld [vmem:[#allocation7 + $0x8] sm:$0xff]  ;;  %v367_v13 = vld [vmem:[#allocation7 + $0x18] sm:$0xff]  ;;  %v699_v14 = vpack.c.bf16 %v275_v9, %v274_v8  ;;  %v276_v16 = vld [vmem:[#allocation5 + $0x30] sm:$0xff]  ;;  %s468_s16 = scalar_lea.sflag [#allocation4], %s1182_s12  ;;  %s902_s9 = scalar_lea.vmem %s1229_s7, 128 }
  0x6d   : > { %695 = vmatprep.subr.bf16.mxu0 %v979_v0  ;;  %v717_v15 = vpack.c.bf16 %v365_v11, %v364_v10  ;;  %v277_v17 = vld [vmem:[#allocation5 + $0x38] sm:$0xff]  ;;  %v720_v18 = vpack.c.bf16 %v367_v13, %v366_v12  ;;  %v368_v19 = vld [vmem:[#allocation7 + $0x20] sm:$0xff]  ;;  %v369_v20 = vld [vmem:[#allocation7 + $0x28] sm:$0xff]  ;;  %p903_p11 = scmp.ne.s32.totalorder %s1229_s7, %s902_s9  ;;  %p1290_p0 = scmp.ne.s32.totalorder %s1285_s23, 0 }
  0x6e   : > { %v702_v21 = vpack.c.bf16 %v277_v17, %v276_v16  ;;  %v278_v22 = vld [vmem:[#allocation5 + $0x40] sm:$0xff]  ;;  %v279_v23 = vld [vmem:[#allocation5 + $0x48] sm:$0xff]  ;;  %v723_v24 = vpack.c.bf16 %v369_v20, %v368_v19  ;;  %v370_v25 = vld [vmem:[#allocation7 + $0x30] sm:$0xff]  ;;  %s982_s22 = smov [#allocation8]  }
  0x6f   : > { %718 = vmatpush3.bf16.msra.mxu1 %v717_v15  ;;  %v371_v26 = vld [vmem:[#allocation7 + $0x38] sm:$0xff]  ;;  %v705_v27 = vpack.c.bf16 %v279_v23, %v278_v22  ;;  %v280_v28 = vld [vmem:[#allocation5 + $0x50] sm:$0xff]  ;;  %v372_v31 = vld [vmem:[#allocation7 + $0x40] sm:$0xff]  ;;  %p904_p1 = pnand %p903_p11, %p1290_p0  ;;  %s906_s13 = sshll.u32 %s982_s22, 4  ;;  %s907_s13 = int_to_ptr.vmem [resolvable:$false] %s906_s13 }
  0x70   : > { %697 = vmatpush3.bf16.msra.mxu0 %v696_v7  ;;  %719 = vmatprep.subr.bf16.mxu1 %v979_v0  ;;  %v281_v29 = vld [vmem:[#allocation5 + $0x58] sm:$0xff]  ;;  %v726_v30 = vpack.c.bf16 %v371_v26, %v370_v25  ;;  %v373_v32 = vld [vmem:[#allocation7 + $0x48] sm:$0xff]  ;;  %v282_v34 = vld [vmem:[#allocation5 + $0x60] sm:$0xff]  ;;  %s908_s29 = scalar_lea.vmem %s907_s13, 256  ;;  %p909_p7 = scmp.lt.s32.totalorder %s1229_s7, %s907_s13 }
  0x71   : > { %698 = vmatprep.subr.bf16.mxu0 %v979_v0  ;;  %v708_v33 = vpack.c.bf16 %v281_v29, %v280_v28  ;;  %v283_v35 = vld [vmem:[#allocation5 + $0x68] sm:$0xff]  ;;  %v729_v36 = vpack.c.bf16 %v373_v32, %v372_v31  ;;  %v374_v37 = vld [vmem:[#allocation7 + $0x50] sm:$0xff]  ;;  %v375_v38 = vld [vmem:[#allocation7 + $0x58] sm:$0xff]  ;;  %p905_p3 = pneg %p904_p1  ;;  %p910_p9 = scmp.lt.s32.totalorder %s908_s29, %s902_s9 }
  0x72   : > { %v711_v39 = vpack.c.bf16 %v283_v35, %v282_v34  ;;  %v284_v40 = vld [vmem:[#allocation5 + $0x70] sm:$0xff]  ;;  %v285_v41 = vld [vmem:[#allocation5 + $0x78] sm:$0xff]  ;;  %v732_v42 = vpack.c.bf16 %v375_v38, %v374_v37  ;;  %v376_v43 = vld [vmem:[#allocation7 + $0x60] sm:$0xff] }
  0x73   : > { %721 = vmatpush3.bf16.msra.mxu1 %v720_v18  ;;  %v377_v44 = vld [vmem:[#allocation7 + $0x68] sm:$0xff]  ;;  %v714_v45 = vpack.c.bf16 %v285_v41, %v284_v40  ;;  %v269_v47 = vld [vmem:[%s1188_s17] sm:$0xff]  ;;  %p911_p12 = por %p910_p9, %p909_p7 }
  0x74   : > { %700 = vmatpush3.bf16.msra.mxu0 %v699_v14  ;;  %722 = vmatprep.subr.bf16.mxu1 %v979_v0  ;;  %v735_v46 = vpack.c.bf16 %v377_v44, %v376_v43  ;;  %v378_v48 = vld [vmem:[#allocation7 + $0x70] sm:$0xff]  ;;  %v379_v49 = vld [vmem:[#allocation7 + $0x78] sm:$0xff] }
  0x75   : > { %701 = vmatprep.subr.bf16.mxu0 %v979_v0  ;;  %v738_v50 = vpack.c.bf16 %v379_v49, %v378_v48  ;;  %v582_v51 = vld [vmem:[%s1273_s2] ss:$0 sm:$0xff]  ;;  %p912_p2 = pnand %p911_p12, %p905_p3 }
  0x76   : > { %v583_v56 = vld [vmem:[%s1275_s4] ss:$0 sm:$0xff] }
  0x77   : > { %724 = vmatpush3.bf16.msra.mxu1 %v723_v24 }
  0x78   : > { %703 = vmatpush3.bf16.msra.mxu0 %v702_v21  ;;  %725 = vmatprep.subr.bf16.mxu1 %v979_v0 }
  0x79   : > { %704 = vmatprep.subr.bf16.mxu0 %v979_v0 }
  0x7b   : > { %727 = vmatpush3.bf16.msra.mxu1 %v726_v30 }
  0x7c   : > { %706 = vmatpush3.bf16.msra.mxu0 %v705_v27  ;;  %728 = vmatprep.subr.bf16.mxu1 %v979_v0 }
  0x7d   : > { %707 = vmatprep.subr.bf16.mxu0 %v979_v0 }
  0x7f   : > { %730 = vmatpush3.bf16.msra.mxu1 %v729_v36 }
  0x80   : > { %709 = vmatpush3.bf16.msra.mxu0 %v708_v33  ;;  %731 = vmatprep.subr.bf16.mxu1 %v979_v0 }
  0x81   : > { %710 = vmatprep.subr.bf16.mxu0 %v979_v0 }
  0x83   : > { %733 = vmatpush3.bf16.msra.mxu1 %v732_v42 }
  0x84   : > { %712 = vmatpush3.bf16.msra.mxu0 %v711_v39  ;;  %734 = vmatprep.subr.bf16.mxu1 %v979_v0 }
  0x85   : > { %713 = vmatprep.subr.bf16.mxu0 %v979_v0 }
  0x87   : > { %736 = vmatpush3.bf16.msra.mxu1 %v735_v46 }
  0x88   : > { %715 = vmatpush3.bf16.msra.mxu0 %v714_v45  ;;  %737 = vmatprep.subr.bf16.mxu1 %v979_v0 }
  0x8b   : > { %655 = vmatmul.mubr.f32.vlgmr.msra.gmra.mrb[0].mxu0 %v269_v47  ;;  %739 = vmatpush3.bf16.msra.mxu1 %v738_v50 }
 0x15e   : > { %v359_v52 = vpop.f32.mrb[0].mxu0 }
 0x15f   : > { %v360_v53 = vadd.f32 %v582_v51, %v359_v52  ;;  %v656_v54 = vpop.f32.mrb[1].mxu0 }
 0x161   : > { %v363_v55 = vmax.f32 %v360_v53, 0.0 }
 0x163   : > { %690 = vmatmul.mubr.f32.vlgmr.msra.gmra.mrb[0].mxu1 %v363_v55 }
 0x236   : > { %v453_v57 = vpop.f32.mrb[0].mxu1 }
 0x237   : > { %v454_v58 = vadd.f32 %v583_v56, %v453_v57  ;;  %v691_v59 = vpop.f32.mrb[1].mxu1 }
 0x239   : > { %457 = vmax.xlane.f32.xlu0 %v454_v58 }
 0x2c6   : > { %v458_v60 = vpop.xlane.xlu0 %457 }
 0x2c7   : > { %v459_v61 = vsub.f32 %v454_v58, %v458_v60 }
 0x2c9   : > { %v460_v62 = vmul.f32 1.442695, %v459_v61 }
 0x2cb   : > { %812 = vpow2.f32 %v460_v62 }
 0x2d5   : > { %v813_v63 = vpop.eup %812 }
 0x2d6   : > { %462 = vadd.xlane.f32.xlu0 %v813_v63 }
 0x363   : > { %v463_v0 = vpop.xlane.xlu0 %462 }
 0x364   : > { %814 = vrcp.f32 %v463_v0 }
 0x36e   : > { %v815_v1 = vpop.eup %814 }
 0x36f   : > { %v465_v2 = vmul.f32 %v815_v1, %v813_v63 }
 0x371   : > { %466 = vst [vmem:[%s268_s28] sm:$0xff] %v465_v2 }
 0x372   : > { %915 = shalt.err (!%p912_p2)
}
 0x373   : > { %s916_s12 = scalar_lea.hbm %s1227_s15, 128  ;;  %s920_s26 = scalar_lea.hbm %s1276_s5, 256 }
 0x374   : > { %p917_p13 = scmp.ne.s32.totalorder %s1227_s15, %s916_s12  ;;  %p921_p4 = scmp.lt.u32.totalorder %s1227_s15, %s1276_s5 }
 0x375   : > { %p922_p5 = scmp.lt.u32.totalorder %s920_s26, %s916_s12  ;;  %p924_p11 = scmp.lt.u32.totalorder %s916_s12, %s1227_s15 }
 0x376   : > { %p918_p6 = pnand %p917_p13, %p1290_p0 }
 0x377   : > { %p923_p8 = por %p922_p5, %p921_p4 }
 0x378   : > { %p919_p10 = pneg %p918_p6 }
 0x379   : > { %p925_p1 = por %p924_p11, %p923_p8 }
 0x37b   : > { %p926_p3 = pnand %p925_p1, %p919_p10 }
 0x37d   : > { %929 = shalt.err (!%p926_p3)
}
 0x37e   : > { %750 = dma.vmem_to_hbm [thread:$0]  (%p1290_p0), %s1229_s7, 128, %s1227_s15, %s468_s16  }
 0x37f PF: > { %s493_s11 = sand.u32 1, %s960_s18   ;;  %p1291_p7 = scmp.ne.s32.totalorder %s1281_s25, 0 }
 0x380   : > { %p1292_p9 = scmp.ge.s32.totalorder %s972_s21, 2  ;;  %s494_s28 = scalar_lea.sflag [#allocation4], %s493_s11 }
 0x382   : > { %p764_p12 = pnand %p1292_p9, %p1291_p7 }
 0x384   : > { %955 = dma.done.wait (!%p764_p12), %s494_s28, 128  }
 0x385   : > { %957 = vsyncadd (!%p764_p12), %s494_s28, 4294967168  ;;  %p19_p2 = scmp.ge.s32.totalorder %s1123_s14, 4   ;;  %s1293_s18 = smov %s964_s19 }
 0x386   : > { %s1294_s19 = smov %s968_s20  ;;  %s1295_s20 = smov %s1139_s27 }
 0x387   : > { %s1296_s21 = smov %s1123_s14  ;;  %21 = sbr.rel (!%p19_p2) target bundleno = 6 (0x6), region = 93 }
 0x38e   :  { %499 = vsyncpa [#allocation3], 1 }
 0x38f   :  { %501 = vsyncpa [#allocation3 + $0x1], 1 }
 0x390   :  { %502 = vsyncpa [#allocation6], 1 }
 0x391   :  { %503 = vsyncpa [#allocation4], 1 }
 0x392   :  { %505 = vsyncpa [#allocation4 + $0x1], 1 }

</bundles_post_ra>
